<compile_context>
chip_gen: v7x
topology: tpu7x:2x2x1
jax: 0.10.0
libtpu: 0.0.40
codegen_flags: <defaults>
</compile_context>

<pallas_src>
import jax
import jax.numpy as jnp
from jax.experimental import pallas as pl
from jax.experimental.pallas import tpu as pltpu

H1 = 64     # first hidden width of the PyTorch module
H1P = 128   # padded to a full lane width (free on the MXU, lane-dense vregs)
H2 = 128    # second hidden width


def _critic_kernel(x_ref, w1_ref, b1_ref, w2_ref, b2_ref, w3_ref, b3_ref, o_ref):
    """One batch tile.  Batch lives on the lane axis; everything is lane-dense.

    x_ref : (K_pad, TILE_B)  compute dtype  -- transposed input tile
    w1_ref: (H1P, K_pad)     compute dtype  -- torch layout (out, in), zero-padded 64->128
    b1_ref: (H1P, 1)         f32
    w2_ref: (H2, H1P)        compute dtype  -- padded input columns are zero
    b2_ref: (H2, 1)          f32
    w3_ref: (H2, 1)          f32            -- final layer as VPU mul + sublane reduce
    b3_ref: (1,)             f32 (SMEM)
    o_ref : (1, TILE_B)      f32            -- lane-dense output row
    """
    x = x_ref[...]

    # Layer 1: Linear(inp_size -> 64, padded to 128) + ReLU   (MXU, f32 accumulation)
    h1 = jnp.dot(w1_ref[...], x, preferred_element_type=jnp.float32)
    h1 = jnp.maximum(h1 + b1_ref[...], 0.0)                      # (H1P, TILE_B) f32

    # Layer 2: Linear(128, 128) + ReLU
    h2 = jnp.dot(w2_ref[...], h1.astype(w2_ref.dtype),
                 preferred_element_type=jnp.float32)
    h2 = jnp.maximum(h2 + b2_ref[...], 0.0)                      # (H2, TILE_B) f32

    # Layer 3: Linear(128, 1) as a VPU multiply + sublane reduction (no N=1 MXU pass).
    out = jnp.sum(h2 * w3_ref[...], axis=0, keepdims=True) + b3_ref[0]  # (1, TILE_B)
    o_ref[...] = out.astype(o_ref.dtype)


def critic_forward_batched(X, params, *, compute_dtype=jnp.bfloat16, tile_b=256):
    """Batched forward: X (B, inp_size) f32 -> (B,) f32.

    tile_b: 256 fills the v6e/v7x 256-wide MXU; 128 is fine on v5e.
    compute_dtype: bf16 MXU inputs / f32 accumulation (v6e/v7x fast path); pass
    jnp.float32 for strict f32 parity (or on v5e).
    """
    w1, b1, w2, b2, w3, b3 = params            # torch layout: (out_features, in_features)
    B, K = X.shape
    assert w1.shape == (H1, K)

    K_pad = max(8, ((K + 7) // 8) * 8)
    B_pad = ((B + tile_b - 1) // tile_b) * tile_b
    n_tiles = B_pad // tile_b

    # Layout plumbing (wrapper side): batch goes on the lane axis so activations and
    # the output are lane-dense.  Padded rows/cols are zero, so they contribute
    # exactly nothing through the ReLUs.
    xT = jnp.zeros((K_pad, B_pad), compute_dtype).at[:K, :B].set(X.T.astype(compute_dtype))
    w1p = jnp.zeros((H1P, K_pad), compute_dtype).at[:H1, :K].set(w1.astype(compute_dtype))
    b1p = jnp.zeros((H1P, 1), jnp.float32).at[:H1, 0].set(b1.astype(jnp.float32))
    w2p = jnp.zeros((H2, H1P), compute_dtype).at[:, :H1].set(w2.astype(compute_dtype))
    b2p = b2.reshape(H2, 1).astype(jnp.float32)
    w3c = w3.reshape(H2, 1).astype(jnp.float32)          # column for the sublane reduce
    b3s = b3.reshape(1).astype(jnp.float32)

    def const(shape):                                    # resident-in-VMEM weight spec
        return pl.BlockSpec(shape, lambda i: (0, 0))

    flops = 2 * B_pad * (K_pad * H1P + H1P * H2 + H2)
    bytes_accessed = int(
        xT.size * xT.dtype.itemsize
        + w1p.size * w1p.dtype.itemsize
        + w2p.size * w2p.dtype.itemsize
        + (b1p.size + b2p.size + w3c.size + b3s.size) * 4
        + B_pad * 4)

    out = pl.pallas_call(
        _critic_kernel,
        out_shape=jax.ShapeDtypeStruct((1, B_pad), jnp.float32),
        grid_spec=pltpu.PrefetchScalarGridSpec(
            num_scalar_prefetch=0,
            grid=(n_tiles,),
            in_specs=[
                pl.BlockSpec((K_pad, tile_b), lambda i: (0, i)),     # x tile (per step)
                const((H1P, K_pad)),                                 # w1  (resident)
                const((H1P, 1)),                                     # b1
                const((H2, H1P)),                                    # w2
                const((H2, 1)),                                      # b2
                const((H2, 1)),                                      # w3 column
                pl.BlockSpec(memory_space=pltpu.MemorySpace.SMEM),   # b3 scalar
            ],
            out_specs=pl.BlockSpec((1, tile_b), lambda i: (0, i)),   # lane-dense row
        ),
        compiler_params=pltpu.CompilerParams(
            dimension_semantics=("parallel",),   # shards batch tiles across TCs on v7x
        ),
        cost_estimate=pl.CostEstimate(flops=flops, transcendentals=0,
                                      bytes_accessed=bytes_accessed),
    )(xT, w1p, b1p, w2p, b2p, w3c, b3s)

    return out[0, :B]


def critic_forward(x, params, **kwargs):
    """Module-equivalent forward: x (inp_size,) -> (1,), same as Critic.forward.

    NOTE: for a single state vector the pallas_call is pure launch/DMA latency;
    prefer plain jitted JAX (critic_reference) on that path and keep the Pallas
    kernel for the batched rollout/eval workload.
    """
    inp_size = params[0].shape[1]
    assert x.shape[0] == inp_size              # same assert as the PyTorch forward
    return critic_forward_batched(x[None, :], params, **kwargs).reshape(1)


def critic_reference(X, params, compute_dtype=jnp.float32):
    """Pure-JAX reference with the same dtype policy (bf16 MXU inputs, f32 accum)."""
    w1, b1, w2, b2, w3, b3 = params
    h1 = jnp.maximum(
        jnp.dot(X.astype(compute_dtype), w1.T.astype(compute_dtype),
                preferred_element_type=jnp.float32) + b1, 0.0)
    h2 = jnp.maximum(
        jnp.dot(h1.astype(compute_dtype), w2.T.astype(compute_dtype),
                preferred_element_type=jnp.float32) + b2, 0.0)
    return (jnp.dot(h2, w3.T.astype(jnp.float32),
                    preferred_element_type=jnp.float32) + b3)[:, 0]


def init_critic_params(key, inp_size):
    """Xavier-uniform weights + zero biases — exactly what Critic.__init__ does.
    Weights kept in the torch (out_features, in_features) layout."""
    def xavier(k, fan_out, fan_in):
        limit = (6.0 / (fan_in + fan_out)) ** 0.5
        return jax.random.uniform(k, (fan_out, fan_in), jnp.float32, -limit, limit)

    k1, k2, k3 = jax.random.split(key, 3)
    return (xavier(k1, H1, inp_size), jnp.zeros((H1,), jnp.float32),
            xavier(k2, H2, H1),       jnp.zeros((H2,), jnp.float32),
            xavier(k3, 1, H2),        jnp.zeros((1,), jnp.float32))


if __name__ == "__main__":
    inp_size = 32
    batch = 200            # ragged on purpose: exercises batch padding + a 2-step grid
    key = jax.random.PRNGKey(0)
    kp, kx = jax.random.split(key)

    params = init_critic_params(kp, inp_size)
    X = jax.random.normal(kx, (batch, inp_size), jnp.float32)

    # Batched path, full f32 (strict parity with the f32 reference), tile_b=128.
    out_f32 = critic_forward_batched(X, params, compute_dtype=jnp.float32, tile_b=128)
    jax.block_until_ready(out_f32)
    ref_f32 = critic_reference(X, params, jnp.float32)
    assert out_f32.shape == (batch,)
    assert jnp.allclose(out_f32, ref_f32, atol=1e-3, rtol=1e-3)

    # Batched path, bf16 MXU inputs / f32 accumulation (v6e/v7x fast path).
    out_bf16 = critic_forward_batched(X, params, compute_dtype=jnp.bfloat16, tile_b=128)
    jax.block_until_ready(out_bf16)
    ref_bf16 = critic_reference(X, params, jnp.bfloat16)
    assert jnp.allclose(out_bf16, ref_bf16, atol=1e-2, rtol=1e-2)

    # Module-equivalent single-vector forward: (inp_size,) -> (1,)
    out_one = critic_forward(X[0], params, compute_dtype=jnp.float32, tile_b=128)
    jax.block_until_ready(out_one)
    assert out_one.shape == (1,)
    assert jnp.allclose(out_one, ref_f32[0:1], atol=1e-3, rtol=1e-3)

    print("KERNEL_OK")
</pallas_src>

<mosaic_0001>
module attributes {stable_mosaic.version = 11 : i64} {
  func.func @_critic_kernel(%arg0: i32, %arg1: memref<32x128xf32, #tpu.memory_space<vmem>>, %arg2: memref<128x32xf32, #tpu.memory_space<vmem>>, %arg3: memref<128x1xf32, #tpu.memory_space<vmem>>, %arg4: memref<128x128xf32, #tpu.memory_space<vmem>>, %arg5: memref<128x1xf32, #tpu.memory_space<vmem>>, %arg6: memref<128x1xf32, #tpu.memory_space<vmem>>, %arg7: memref<1xf32, #tpu.memory_space<smem>>, %arg8: memref<1x128xf32, #tpu.memory_space<vmem>>) attributes {dimension_semantics = [#tpu.dimension_semantics<parallel>], iteration_bounds = array<i64: 2>, scalar_prefetch = 0 : i64, scratch_operands = 0 : i64, tpu.core_type = #tpu.core_type<tc>, window_params = [{transform_indices = @transform_0, window_bounds = array<i64: 32, 128>}, {pipeline_mode = #tpu.pipeline_mode<synchronous>, transform_indices = @transform_1, window_bounds = array<i64: 128, 32>}, {pipeline_mode = #tpu.pipeline_mode<synchronous>, transform_indices = @transform_2, window_bounds = array<i64: 128, 1>}, {pipeline_mode = #tpu.pipeline_mode<synchronous>, transform_indices = @transform_3, window_bounds = array<i64: 128, 128>}, {pipeline_mode = #tpu.pipeline_mode<synchronous>, transform_indices = @transform_4, window_bounds = array<i64: 128, 1>}, {pipeline_mode = #tpu.pipeline_mode<synchronous>, transform_indices = @transform_5, window_bounds = array<i64: 128, 1>}, {transform_indices = @transform_6, window_bounds = array<i64: 1>}, {transform_indices = @transform_7, window_bounds = array<i64: 1, 128>}]} {
    %c0 = arith.constant 0 : index
    %c0_0 = arith.constant 0 : index
    %0 = vector.load %arg1[%c0, %c0_0] : memref<32x128xf32, #tpu.memory_space<vmem>>, vector<32x128xf32>
    %c0_1 = arith.constant 0 : index
    %c0_2 = arith.constant 0 : index
    %1 = vector.load %arg2[%c0_1, %c0_2] : memref<128x32xf32, #tpu.memory_space<vmem>>, vector<128x32xf32>
    %cst = arith.constant dense<0.000000e+00> : vector<128x128xf32>
    %2 = tpu.matmul %1, %0, %cst {dimension_numbers = #tpu.dot_dimension_numbers<[1], [0], [0], [1], [0, 0, 1, 1], [], []>} : vector<128x32xf32>, vector<32x128xf32>, vector<128x128xf32> -> vector<128x128xf32>
    %c0_3 = arith.constant 0 : index
    %c0_4 = arith.constant 0 : index
    %3 = vector.load %arg3[%c0_3, %c0_4] : memref<128x1xf32, #tpu.memory_space<vmem>>, vector<128x1xf32>
    %4 = vector.broadcast %3 : vector<128x1xf32> to vector<128x128xf32>
    %5 = arith.addf %2, %4 : vector<128x128xf32>
    %cst_5 = arith.constant 0.000000e+00 : f32
    %6 = vector.broadcast %cst_5 : f32 to vector<128x128xf32>
    %7 = arith.maximumf %5, %6 : vector<128x128xf32>
    %c0_6 = arith.constant 0 : index
    %c0_7 = arith.constant 0 : index
    %8 = vector.load %arg4[%c0_6, %c0_7] : memref<128x128xf32, #tpu.memory_space<vmem>>, vector<128x128xf32>
    %cst_8 = arith.constant dense<0.000000e+00> : vector<128x128xf32>
    %9 = tpu.matmul %8, %7, %cst_8 {dimension_numbers = #tpu.dot_dimension_numbers<[1], [0], [0], [1], [0, 0, 1, 1], [], []>} : vector<128x128xf32>, vector<128x128xf32>, vector<128x128xf32> -> vector<128x128xf32>
    %c0_9 = arith.constant 0 : index
    %c0_10 = arith.constant 0 : index
    %10 = vector.load %arg5[%c0_9, %c0_10] : memref<128x1xf32, #tpu.memory_space<vmem>>, vector<128x1xf32>
    %11 = vector.broadcast %10 : vector<128x1xf32> to vector<128x128xf32>
    %12 = arith.addf %9, %11 : vector<128x128xf32>
    %cst_11 = arith.constant 0.000000e+00 : f32
    %13 = vector.broadcast %cst_11 : f32 to vector<128x128xf32>
    %14 = arith.maximumf %12, %13 : vector<128x128xf32>
    %c0_12 = arith.constant 0 : index
    %c0_13 = arith.constant 0 : index
    %15 = vector.load %arg6[%c0_12, %c0_13] : memref<128x1xf32, #tpu.memory_space<vmem>>, vector<128x1xf32>
    %16 = vector.broadcast %15 : vector<128x1xf32> to vector<128x128xf32>
    %17 = arith.mulf %14, %16 : vector<128x128xf32>
    %cst_14 = arith.constant dense<0.000000e+00> : vector<128xf32>
    %18 = vector.multi_reduction <add>, %17, %cst_14 [0] : vector<128x128xf32> to vector<128xf32>
    %19 = vector.shape_cast %18 : vector<128xf32> to vector<1x128xf32>
    %c0_15 = arith.constant 0 : index
    %20 = memref.load %arg7[%c0_15] : memref<1xf32, #tpu.memory_space<smem>>
    %21 = vector.broadcast %20 : f32 to vector<1x128xf32>
    %22 = arith.addf %19, %21 : vector<1x128xf32>
    %c0_16 = arith.constant 0 : index
    %c0_17 = arith.constant 0 : index
    %23 = vector.load %arg8[%c0_16, %c0_17] : memref<1x128xf32, #tpu.memory_space<vmem>>, vector<1x128xf32>
    tpu.vector_store %arg8[%c0_16, %c0_17], %22 {strides = array<i32>} : memref<1x128xf32, #tpu.memory_space<vmem>>, vector<1x128xf32>,
    return
  }
  func.func @transform_0(%arg0: i32) -> (i32, i32) {
    %c0_i32 = arith.constant 0 : i32
    %c0_i32_0 = arith.constant 0 : i32
    return %c0_i32, %arg0 : i32, i32
  }
  func.func @transform_1(%arg0: i32) -> (i32, i32) {
    %c0_i32 = arith.constant 0 : i32
    %c0_i32_0 = arith.constant 0 : i32
    %c0_i32_1 = arith.constant 0 : i32
    return %c0_i32, %c0_i32_0 : i32, i32
  }
  func.func @transform_2(%arg0: i32) -> (i32, i32) {
    %c0_i32 = arith.constant 0 : i32
    %c0_i32_0 = arith.constant 0 : i32
    %c0_i32_1 = arith.constant 0 : i32
    return %c0_i32, %c0_i32_0 : i32, i32
  }
  func.func @transform_3(%arg0: i32) -> (i32, i32) {
    %c0_i32 = arith.constant 0 : i32
    %c0_i32_0 = arith.constant 0 : i32
    %c0_i32_1 = arith.constant 0 : i32
    return %c0_i32, %c0_i32_0 : i32, i32
  }
  func.func @transform_4(%arg0: i32) -> (i32, i32) {
    %c0_i32 = arith.constant 0 : i32
    %c0_i32_0 = arith.constant 0 : i32
    %c0_i32_1 = arith.constant 0 : i32
    return %c0_i32, %c0_i32_0 : i32, i32
  }
  func.func @transform_5(%arg0: i32) -> (i32, i32) {
    %c0_i32 = arith.constant 0 : i32
    %c0_i32_0 = arith.constant 0 : i32
    %c0_i32_1 = arith.constant 0 : i32
    return %c0_i32, %c0_i32_0 : i32, i32
  }
  func.func @transform_6(%arg0: i32) -> i32 {
    %c0_i32 = arith.constant 0 : i32
    %c0_i32_0 = arith.constant 0 : i32
    return %c0_i32 : i32
  }
  func.func @transform_7(%arg0: i32) -> (i32, i32) {
    %c0_i32 = arith.constant 0 : i32
    %c0_i32_0 = arith.constant 0 : i32
    return %c0_i32, %arg0 : i32, i32
  }
}

</mosaic_0001>

<bundles_post_ra>
// kernel: tpu_custom_call.1
= control target key start
LH: loop header
LB: loop body
LE: loop exit
PB: predicated region body
PF: predicated region fallthrough
CT: control target
= control target key end

     0   :  { %s1872_s0 = inlined_call_operand.vmem [shape: f32[32,256], index: 0, kind: input, shape index: {}]   ;;  %s1873_s1 = inlined_call_operand.vmem [shape: f32[128,32], index: 1, kind: input, shape index: {}]   ;;  %s1874_s2 = inlined_call_operand.vmem [shape: f32[128,1], index: 2, kind: input, shape index: {}]   ;;  %s1875_s3 = inlined_call_operand.vmem [shape: f32[128,128], index: 3, kind: input, shape index: {}]   ;;  %s1876_s4 = inlined_call_operand.vmem [shape: f32[128,1], index: 4, kind: input, shape index: {}]   ;;  %s1877_s5 = inlined_call_operand.vmem [shape: f32[128,1], index: 5, kind: input, shape index: {}]   ;;  %s1878_s6 = inlined_call_operand.<no memory space> [shape: f32[1], index: 6, kind: input, shape index: {}]   ;;  %s1879_s7 = inlined_call_operand.hbm [shape: f32[1,256], index: 7, kind: output, shape index: {}]  }
   0x1   :  { %12 = sst [smem:[#allocation2]] %s1878_s6 }
   0x2   :  { %13 = vsyncpa [#allocation5], 0 }
   0x3   :  { %15 = vsyncpa [#allocation5 + $0x1], 0  ;;  %s1506_s26 = smov 0   ;;  %s1508_s27 = smov 0  }
   0x4   :  { %s1510_s28 = smov 0   ;;  %s1512_s29 = smov 0  }
   0x5 LB: > { %s1132_s6 = sadd.s32 4294967295, %s1459_s29   ;;  %s1133_s30 = sadd.s32 4294967294, %s1459_s29   ;;  %s1459_s29 = sphi %s1512_s29, %s1885_s29   ;;  %s1455_s28 = sphi %s1510_s28, %s1884_s28   ;;  %s1451_s27 = sphi %s1508_s27, %s1883_s27   ;;  %s1447_s26 = sphi %s1506_s26, %s1882_s26  }
   0x6   : > { %s1529_s8 = sadd.s32 1, %s1459_s29   ;;  %s28_s9 = sadd.s32 1, %s1455_s28 }
   0x7   : > { %s25_s10 = ssub.s32 %s1459_s29, %s1529_s8  ;;  %p35_p0 = scmp.ne.s32.totalorder %s1455_s28, %s1451_s27 }
   0x8   : > { %p26_p1 = scmp.eq.s32.totalorder %s25_s10, 0  ;;  %p36_p2 = scmp.eq.s32.totalorder %s1459_s29, 0 }
   0x9   : > { %p191_p3 = scmp.eq.s32.totalorder %s1132_s6, 1  ;;  %p196_p4 = scmp.ne.s32.totalorder %s1451_s27, %s1447_s26 }
   0xa   : > { %s1542_s11 = scalar_select %p26_p1, %s1455_s28, %s28_s9  }
   0xb   : > { %p37_p5 = por %p36_p2, %p35_p0  ;;  %p1544_p6 = por %p191_p3, %p35_p0 }
   0xc   : > { %p197_p7 = scmp.eq.s32.totalorder %s1133_s30, 1  ;;  %p1135_p9 = scmp.ge.s32.totalorder %s1459_s29, 2 }
   0xe   : > { %p1548_p8 = por %p197_p7, %p196_p4  ;;  %231 = sbr.rel (%p1135_p9) target bundleno = 28 (0x1c), region = 40 }
  0x15   : > { %234 = sbr.rel (!%p37_p5) target bundleno = 28 (0x1c), region = 44  ;;  %s236_s14 = sand.u32 (%p37_p5), 1, %s1455_s28  }
  0x16   : > { %s1137_s15 = sshll.u32 (%p37_p5), %s1459_s29, 3  ;;  %s1136_s16 = sshll.u32 (%p37_p5), %s236_s14, 5 }
  0x17   : > { %s240_s19 = scalar_lea.vmem (%p37_p5), %s1872_s0, %s1137_s15  ;;  %s238_s20 = scalar_lea.vmem (%p37_p5), [#allocation3], %s1136_s16 }
  0x18   : > { %v274_v0 = vld [vmem:[%s240_s19] sm:$0xff] (%p37_p5)  ;;  %v276_v1 = vld [vmem:[%s240_s19 + $0x10] sm:$0xff] (%p37_p5) }
  0x19   : > { %v278_v2 = vld [vmem:[%s240_s19 + $0x20] sm:$0xff] (%p37_p5)  ;;  %275 = vst [vmem:[%s238_s20] sm:$0xff] (%p37_p5), %v274_v0  ;;  %277 = vst [vmem:[%s238_s20 + $0x8] sm:$0xff] (%p37_p5), %v276_v1  ;;  %v280_v3 = vld [vmem:[%s240_s19 + $0x30] sm:$0xff] (%p37_p5) }
  0x1a   : > { %279 = vst [vmem:[%s238_s20 + $0x10] sm:$0xff] (%p37_p5), %v278_v2  ;;  %281 = vst [vmem:[%s238_s20 + $0x18] sm:$0xff] (%p37_p5), %v280_v3 }
  0x1c PF: > { %p1138_p10 = scmp.ge.s32.totalorder %s1459_s29, 1  ;;  %p286_p11 = scmp.lt.s32.totalorder %s1459_s29, 3 }
  0x1e   : > { %p287_p12 = pnand %p1138_p10, %p286_p11 }
  0x1f   : > { %v343_v4 = vld [vmem:[%s1874_s2] sm:$0xff] (!%p287_p12)  ;;  %s1566_s23 = sand.u32 (!%p287_p12), 1, %s1451_s27   ;;  %v345_v5 = vld [vmem:[%s1874_s2 + $0x10] sm:$0xff] (!%p287_p12)  ;;  %vm439_vm0 = vcmask (!%p287_p12), 261120   ;;  %v1461_v6 = vmov (!%p287_p12), 0   ;;  %v344_v8 = vld [vmem:[%s1874_s2 + $0x8] sm:$0xff] (!%p287_p12) }
  0x20   : > { %290 = sbr.rel (%p287_p12) target bundleno = 575 (0x23f), region = 82  ;;  %1395 = vset.pattern.permute.xlu0 (!%p287_p12), %v1461_v6  ;;  %1396 = vset.pattern.permute.xlu1 (!%p287_p12), %v1461_v6  ;;  %s1139_s30 = sshll.u32 (!%p287_p12), %s1566_s23, 5  ;;  %v327_v7 = vld [vmem:[%s1873_s1] sm:$0xff] (!%p287_p12)  ;;  %v346_v14 = vld [vmem:[%s1874_s2 + $0x18] sm:$0xff] (!%p287_p12)  ;;  %v348_v17 = vld [vmem:[%s1874_s2 + $0x28] sm:$0xff] (!%p287_p12) }
  0x21   : > { %361 = vperm.xlu0 (!%p287_p12), %1395, %v343_v4   ;;  %371 = vperm.xlu1 (!%p287_p12), %1396, %v345_v5   ;;  %s295_s16 = scalar_lea.vmem (!%p287_p12), [#allocation3], %s1139_s30  ;;  %v347_v16 = vld [vmem:[%s1874_s2 + $0x20] sm:$0xff] (!%p287_p12)  ;;  %v328_v18 = vld [vmem:[%s1873_s1 + $0x8] sm:$0xff] (!%p287_p12)  ;;  %v349_v19 = vld [vmem:[%s1874_s2 + $0x30] sm:$0xff] (!%p287_p12)  ;;  %s1055_s15 = sld [smem:[#allocation2]] (!%p287_p12) }
  0x22   : > { %v323_v9 = vld [vmem:[%s295_s16] sm:$0xff] (!%p287_p12)  ;;  %v324_v10 = vld [vmem:[%s295_s16 + $0x8] sm:$0xff] (!%p287_p12)  ;;  %v325_v11 = vld [vmem:[%s295_s16 + $0x10] sm:$0xff] (!%p287_p12)  ;;  %1219 = vmatprep.mubr.msk.f32.mxu0 (!%p287_p12), %vm439_vm0, %v327_v7  ;;  %s322_s17 = scalar_lea.vmem (!%p287_p12), [#allocation4], %s1566_s23  ;;  %s1060_s22 = scalar_lea.sflag (!%p287_p12), [#allocation5], %s1566_s23 }
  0x23   : > { %v1299_v12 = vpack.c.bf16 (!%p287_p12), %v324_v10, %v323_v9  ;;  %v326_v13 = vld [vmem:[%s295_s16 + $0x18] sm:$0xff] (!%p287_p12)  ;;  %v329_v20 = vld [vmem:[%s1873_s1 + $0x10] sm:$0xff] (!%p287_p12)  ;;  %v351_v23 = vld [vmem:[%s1874_s2 + $0x40] sm:$0xff] (!%p287_p12)  ;;  %s1156_s16 = sshll.u32 (!%p287_p12), %s1132_s6, 4  ;;  %s1072_s18 = sshll.u32 (!%p287_p12), %s322_s17, 4  ;;  %s1830_s18 = int_to_ptr.vmem [resolvable:$true] %s1072_s18 }
  0x24   : > { %v1303_v15 = vpack.c.bf16 (!%p287_p12), %v326_v13, %v325_v11  ;;  %v350_v21 = vld [vmem:[%s1874_s2 + $0x38] sm:$0xff] (!%p287_p12)  ;;  %v331_v24 = vld [vmem:[%s1873_s1 + $0x20] sm:$0xff] (!%p287_p12)  ;;  %v352_v25 = vld [vmem:[%s1874_s2 + $0x48] sm:$0xff] (!%p287_p12)  ;;  %s1828_s21 = scalar_lea.hbm (!%p287_p12), %s1879_s7, %s1156_s16  ;;  %s1397_s24 = scalar_lea.vmem (!%p287_p12), %s1830_s18, 16 }
  0x25   : > { %1300 = vmatprep.subr.bf16.mxu0 (!%p287_p12), %v1299_v12  ;;  %366 = vperm.xlu0 (!%p287_p12), %1395, %v344_v8   ;;  %v330_v22 = vld [vmem:[%s1873_s1 + $0x18] sm:$0xff] (!%p287_p12)  ;;  %v332_v26 = vld [vmem:[%s1873_s1 + $0x28] sm:$0xff] (!%p287_p12)  ;;  %v353_v27 = vld [vmem:[%s1874_s2 + $0x50] sm:$0xff] (!%p287_p12)  ;;  %p1398_p13 = scmp.ne.s32.totalorder (!%p287_p12), %s1830_s18, %s1397_s24  ;;  %s1462_s6 = smov (!%p287_p12), [#allocation4]  }
  0x26   : > { %1302 = vmatpush3.bf16.msra.mxu0 (!%p287_p12), %v1299_v12  ;;  %376 = vperm.xlu1 (!%p287_p12), %1396, %v346_v14   ;;  %v333_v28 = vld [vmem:[%s1873_s1 + $0x30] sm:$0xff] (!%p287_p12)  ;;  %v354_v29 = vld [vmem:[%s1874_s2 + $0x58] sm:$0xff] (!%p287_p12)  ;;  %v355_v31 = vld [vmem:[%s1874_s2 + $0x60] sm:$0xff] (!%p287_p12)  ;;  %s1401_s25 = sshll.u32 (!%p287_p12), %s1462_s6, 4  ;;  %s1402_s25 = int_to_ptr.vmem [resolvable:$false] %s1401_s25 }
  0x27   : > { %1304 = vmatprep.subr.bf16.mxu0 %v1303_v15  ;;  %v334_v30 = vld [vmem:[%s1873_s1 + $0x38] sm:$0xff]  ;;  %v335_v32 = vld [vmem:[%s1873_s1 + $0x40] sm:$0xff]  ;;  %v356_v33 = vld [vmem:[%s1874_s2 + $0x68] sm:$0xff]  ;;  %p1399_p0 = pnand %p1398_p13, %p1544_p6  ;;  %s1403_s30 = scalar_lea.vmem %s1402_s25, 32 }
  0x28   : > { %v336_v34 = vld [vmem:[%s1873_s1 + $0x48] sm:$0xff]  ;;  %v357_v35 = vld [vmem:[%s1874_s2 + $0x70] sm:$0xff]  ;;  %v358_v37 = vld [vmem:[%s1874_s2 + $0x78] sm:$0xff]  ;;  %p1404_p2 = scmp.lt.s32.totalorder %s1830_s18, %s1402_s25  ;;  %p1405_p3 = scmp.lt.s32.totalorder %s1403_s30, %s1397_s24 }
  0x29   : > { %381 = vperm.xlu0 %1395, %v347_v16   ;;  %v337_v36 = vld [vmem:[%s1873_s1 + $0x50] sm:$0xff]  ;;  %v338_v38 = vld [vmem:[%s1873_s1 + $0x58] sm:$0xff]  ;;  %v665_v39 = vld [vmem:[%s1876_s4] sm:$0xff]  ;;  %p1400_p1 = pneg %p1399_p0 }
  0x2a   : > { %1306 = vmatpush3.bf16.msra.mxu0 %v1303_v15  ;;  %386 = vperm.xlu1 %1396, %v348_v17   ;;  %v339_v40 = vld [vmem:[%s1873_s1 + $0x60] sm:$0xff]  ;;  %v666_v41 = vld [vmem:[%s1876_s4 + $0x8] sm:$0xff]  ;;  %v667_v43 = vld [vmem:[%s1876_s4 + $0x10] sm:$0xff]  ;;  %p1406_p4 = por %p1405_p3, %p1404_p2 }
  0x2b   : > { %v340_v42 = vld [vmem:[%s1873_s1 + $0x68] sm:$0xff]  ;;  %v341_v44 = vld [vmem:[%s1873_s1 + $0x70] sm:$0xff]  ;;  %v668_v45 = vld [vmem:[%s1876_s4 + $0x18] sm:$0xff] }
  0x2c   : > { %v342_v46 = vld [vmem:[%s1873_s1 + $0x78] sm:$0xff]  ;;  %v922_v47 = vld [vmem:[%s1877_s5] sm:$0xff]  ;;  %v923_v48 = vld [vmem:[%s1877_s5 + $0x8] sm:$0xff]  ;;  %p1407_p5 = pnand %p1406_p4, %p1400_p1 }
  0x2d   : > { %1220 = vmatmul.mubr.msk.f32.vlgmr.msra.gmra.mrb[0].mxu0 %vm439_vm0, %v328_v18  ;;  %391 = vperm.xlu0 %1395, %v349_v19   ;;  %v669_v49 = vld [vmem:[%s1876_s4 + $0x20] sm:$0xff]  ;;  %v924_v50 = vld [vmem:[%s1877_s5 + $0x10] sm:$0xff]  ;;  %v670_v51 = vld [vmem:[%s1876_s4 + $0x28] sm:$0xff] }
  0x2e   : > { %1222 = vmatprep.mubr.msk.f32.mxu0 %vm439_vm0, %v329_v20  ;;  %396 = vperm.xlu1 %1396, %v350_v21   ;;  %v925_v52 = vld [vmem:[%s1877_s5 + $0x18] sm:$0xff]  ;;  %v671_v53 = vld [vmem:[%s1876_s4 + $0x30] sm:$0xff]  ;;  %v926_v54 = vld [vmem:[%s1877_s5 + $0x20] sm:$0xff] }
  0x2f   : > { %v672_v55 = vld [vmem:[%s1876_s4 + $0x38] sm:$0xff]  ;;  %v927_v56 = vld [vmem:[%s1877_s5 + $0x28] sm:$0xff]  ;;  %v673_v57 = vld [vmem:[%s1876_s4 + $0x40] sm:$0xff] }
  0x30   : > { %v928_v58 = vld [vmem:[%s1877_s5 + $0x30] sm:$0xff]  ;;  %v674_v59 = vld [vmem:[%s1876_s4 + $0x48] sm:$0xff]  ;;  %v929_v60 = vld [vmem:[%s1877_s5 + $0x38] sm:$0xff] }
  0x31   : > { %1223 = vmatmul.mubr.msk.f32.gmra.mrb[2].mxu0 %vm439_vm0, %v330_v22  ;;  %401 = vperm.xlu0 %1395, %v351_v23   ;;  %v675_v61 = vld [vmem:[%s1876_s4 + $0x50] sm:$0xff]  ;;  %v930_v62 = vld [vmem:[%s1877_s5 + $0x40] sm:$0xff]  ;;  %v676_v63 = vld [vmem:[%s1876_s4 + $0x58] sm:$0xff] }
  0x32   : > { %1225 = vmatprep.mubr.msk.f32.mxu0 %vm439_vm0, %v331_v24  ;;  %406 = vperm.xlu1 %1396, %v352_v25   ;;  %v931_v0 = vld [vmem:[%s1877_s5 + $0x48] sm:$0xff]  ;;  %v677_v1 = vld [vmem:[%s1876_s4 + $0x60] sm:$0xff]  ;;  %v932_v2 = vld [vmem:[%s1877_s5 + $0x50] sm:$0xff] }
  0x33   : > { %v678_v3 = vld [vmem:[%s1876_s4 + $0x68] sm:$0xff]  ;;  %v933_v4 = vld [vmem:[%s1877_s5 + $0x58] sm:$0xff]  ;;  %v679_v5 = vld [vmem:[%s1876_s4 + $0x70] sm:$0xff] }
  0x34   : > { %v934_v6 = vld [vmem:[%s1877_s5 + $0x60] sm:$0xff]  ;;  %v680_v7 = vld [vmem:[%s1876_s4 + $0x78] sm:$0xff]  ;;  %v935_v8 = vld [vmem:[%s1877_s5 + $0x68] sm:$0xff] }
  0x35   : > { %1226 = vmatmul.mubr.msk.f32.gmra.mrb[4].mxu0 %vm439_vm0, %v332_v26  ;;  %411 = vperm.xlu0 %1395, %v353_v27   ;;  %v936_v9 = vld [vmem:[%s1877_s5 + $0x70] sm:$0xff]  ;;  %v937_v10 = vld [vmem:[%s1877_s5 + $0x78] sm:$0xff]  ;;  %v649_v11 = vld [vmem:[%s1875_s3] sm:$0xff] }
  0x36   : > { %1228 = vmatprep.mubr.msk.f32.mxu0 %vm439_vm0, %v333_v28  ;;  %416 = vperm.xlu1 %1396, %v354_v29   ;;  %v655_v12 = vld [vmem:[%s1875_s3 + $0x30] sm:$0xff] }
  0x37   : > { %1284 = vmatprep.mubr.f32.mxu1 %v655_v12 }
  0x39   : > { %1229 = vmatmul.mubr.msk.f32.gmra.mrb[6].mxu0 %vm439_vm0, %v334_v30  ;;  %421 = vperm.xlu0 %1395, %v355_v31  }
  0x3a   : > { %1231 = vmatprep.mubr.msk.f32.mxu0 %vm439_vm0, %v335_v32  ;;  %426 = vperm.xlu1 %1396, %v356_v33  }
  0x3d   : > { %1232 = vmatmul.mubr.msk.f32.gmra.mrb[8].mxu0 %vm439_vm0, %v336_v34  ;;  %431 = vperm.xlu0 %1395, %v357_v35  }
  0x3e   : > { %1234 = vmatprep.mubr.msk.f32.mxu0 %vm439_vm0, %v337_v36  ;;  %436 = vperm.xlu1 %1396, %v358_v37  }
  0x41   : > { %1235 = vmatmul.mubr.msk.f32.gmra.mrb[10].mxu0 %vm439_vm0, %v338_v38  ;;  %683 = vperm.xlu0 %1395, %v665_v39  }
  0x42   : > { %1237 = vmatprep.mubr.msk.f32.mxu0 %vm439_vm0, %v339_v40  ;;  %688 = vperm.xlu1 %1396, %v666_v41  }
  0x45   : > { %1238 = vmatmul.mubr.msk.f32.gmra.mrb[12].mxu0 %vm439_vm0, %v340_v42  ;;  %693 = vperm.xlu0 %1395, %v667_v43  }
  0x46   : > { %1240 = vmatprep.mubr.msk.f32.mxu0 %vm439_vm0, %v341_v44  ;;  %698 = vperm.xlu1 %1396, %v668_v45  }
  0x49   : > { %1241 = vmatmul.mubr.msk.f32.gmra.mrb[14].mxu0 %vm439_vm0, %v342_v46  ;;  %940 = vperm.xlu0 %1395, %v922_v47  }
  0x4a   : > { %945 = vperm.xlu1 %1396, %v923_v48   ;;  %1275 = vmatprep.mubr.f32.mxu0 %v649_v11 }
  0x4d   : > { %703 = vperm.xlu0 %1395, %v669_v49  }
  0x4e   : > { %950 = vperm.xlu1 %1396, %v924_v50  }
  0x51   : > { %708 = vperm.xlu0 %1395, %v670_v51  }
  0x52   : > { %955 = vperm.xlu1 %1396, %v925_v52  }
  0x55   : > { %713 = vperm.xlu0 %1395, %v671_v53  }
  0x56   : > { %960 = vperm.xlu1 %1396, %v926_v54  }
  0x59   : > { %718 = vperm.xlu0 %1395, %v672_v55  }
  0x5a   : > { %965 = vperm.xlu1 %1396, %v927_v56  }
  0x5d   : > { %723 = vperm.xlu0 %1395, %v673_v57  }
  0x5e   : > { %970 = vperm.xlu1 %1396, %v928_v58  }
  0x61   : > { %728 = vperm.xlu0 %1395, %v674_v59  }
  0x62   : > { %975 = vperm.xlu1 %1396, %v929_v60  }
  0x65   : > { %733 = vperm.xlu0 %1395, %v675_v61  }
  0x66   : > { %980 = vperm.xlu1 %1396, %v930_v62  }
  0x69   : > { %738 = vperm.xlu0 %1395, %v676_v63  }
  0x6a   : > { %985 = vperm.xlu1 %1396, %v931_v0  }
  0x6d   : > { %743 = vperm.xlu0 %1395, %v677_v1  }
  0x6e   : > { %990 = vperm.xlu1 %1396, %v932_v2  }
  0x71   : > { %748 = vperm.xlu0 %1395, %v678_v3  }
  0x72   : > { %995 = vperm.xlu1 %1396, %v933_v4  }
  0x75   : > { %753 = vperm.xlu0 %1395, %v679_v5  }
  0x76   : > { %1000 = vperm.xlu1 %1396, %v934_v6  }
  0x79   : > { %758 = vperm.xlu0 %1395, %v680_v7  }
  0x7a   : > { %1005 = vperm.xlu1 %1396, %v935_v8  }
  0x7d   : > { %1010 = vperm.xlu0 %1395, %v936_v9  }
  0x7e   : > { %1015 = vperm.xlu1 %1396, %v937_v10  }
  0xa0   : > { %v372_v13 = vpop.permute.xlu1 %371  ;;  %v362_v14 = vpop.permute.xlu0 %361 }
  0xa4   : > { %v367_v16 = vpop.permute.xlu0 %366 }
  0xa5   : > { %v377_v15 = vpop.permute.xlu1 %376 }
  0xa8   : > { %v382_v18 = vpop.permute.xlu0 %381 }
  0xa9   : > { %v387_v17 = vpop.permute.xlu1 %386 }
  0xac   : > { %v392_v27 = vpop.permute.xlu0 %391 }
  0xad   : > { %v397_v24 = vpop.permute.xlu1 %396 }
  0xb0   : > { %v402_v40 = vpop.permute.xlu0 %401 }
  0xb1   : > { %v407_v37 = vpop.permute.xlu1 %406 }
  0xb4   : > { %v412_v52 = vpop.permute.xlu0 %411 }
  0xb5   : > { %v417_v49 = vpop.permute.xlu1 %416 }
  0xb8   : > { %v422_v1 = vpop.permute.xlu0 %421 }
  0xb9   : > { %v427_v62 = vpop.permute.xlu1 %426 }
  0xbd   : > { %v437_v10 = vpop.permute.xlu1 %436 }
 0x100   : > { %v1221_v19 = vpop.f32.mrb[0].mxu0 }
 0x101   : > { %v560_v20 = vadd.f32 %v1221_v19, %v367_v16  ;;  %v554_v21 = vpop.f32.mrb[1].mxu0 }
 0x102   : > { %v555_v22 = vadd.f32 %v554_v21, %v362_v14  ;;  %v650_v21 = vld [vmem:[%s1875_s3 + $0x8] sm:$0xff] }
 0x103   : > { %v634_v23 = vmax.f32 %v560_v20, 0.0 }
 0x104   : > { %v633_v25 = vmax.f32 %v555_v22, 0.0  ;;  %v1224_v26 = vpop.f32.mrb[2].mxu0  ;;  %v656_v22 = vld [vmem:[%s1875_s3 + $0x38] sm:$0xff] }
 0x105   : > { %v570_v28 = vadd.f32 %v1224_v26, %v377_v15  ;;  %v564_v29 = vpop.f32.mrb[3].mxu0  ;;  %v658_v26 = vld [vmem:[%s1875_s3 + $0x48] sm:$0xff] }
 0x106   : > { %v1307_v30 = vpack.c.bf16 %v634_v23, %v633_v25  ;;  %v565_v31 = vadd.f32 %v564_v29, %v372_v13  ;;  %v432_v13 = vpop.permute.xlu0 %431  ;;  %v651_v23 = vld [vmem:[%s1875_s3 + $0x10] sm:$0xff]  ;;  %v652_v25 = vld [vmem:[%s1875_s3 + $0x18] sm:$0xff]  ;;  %v654_v29 = vld [vmem:[%s1875_s3 + $0x28] sm:$0xff] }
 0x107   : > { %v636_v32 = vmax.f32 %v570_v28, 0.0  ;;  %v659_v28 = vld [vmem:[%s1875_s3 + $0x50] sm:$0xff] }
 0x108   : > { %v635_v33 = vmax.f32 %v565_v31, 0.0  ;;  %v1227_v34 = vpop.f32.mrb[4].mxu0  ;;  %1308 = vmatprep.subr.bf16.mxu0 %v1307_v30  ;;  %1339 = vmatprep.subr.bf16.mxu1 %v1307_v30  ;;  %v661_v31 = vld [vmem:[%s1875_s3 + $0x60] sm:$0xff] }
 0x109   : > { %v580_v35 = vadd.f32 %v1227_v34, %v387_v17  ;;  %v574_v36 = vpop.f32.mrb[5].mxu0  ;;  %1310 = vmatpush3.bf16.msra.mxu0 %v1307_v30  ;;  %1347 = vmatpush3.bf16.msra.mxu1 %v1307_v30  ;;  %v660_v30 = vld [vmem:[%s1875_s3 + $0x58] sm:$0xff] }
 0x10a   : > { %v1311_v38 = vpack.c.bf16 %v636_v32, %v635_v33  ;;  %v575_v39 = vadd.f32 %v574_v36, %v382_v18  ;;  %v662_v32 = vld [vmem:[%s1875_s3 + $0x68] sm:$0xff]  ;;  %v663_v33 = vld [vmem:[%s1875_s3 + $0x70] sm:$0xff]  ;;  %v664_v34 = vld [vmem:[%s1875_s3 + $0x78] sm:$0xff]  ;;  %v689_v36 = vpop.permute.xlu1 %688 }
 0x10b   : > { %v638_v41 = vmax.f32 %v580_v35, 0.0  ;;  %v684_v35 = vpop.permute.xlu0 %683 }
 0x10c   : > { %v637_v42 = vmax.f32 %v575_v39, 0.0  ;;  %v1230_v43 = vpop.f32.mrb[6].mxu0  ;;  %1312 = vmatprep.subr.bf16.mxu0 %v1311_v38  ;;  %1340 = vmatprep.subr.bf16.mxu1 %v1311_v38 }
 0x10d   : > { %v590_v44 = vadd.f32 %v1230_v43, %v397_v24  ;;  %v584_v45 = vpop.f32.mrb[7].mxu0  ;;  %1314 = vmatpush3.bf16.msra.mxu0 %v1311_v38  ;;  %1348 = vmatpush3.bf16.msra.mxu1 %v1311_v38  ;;  %v657_v24 = vld [vmem:[%s1875_s3 + $0x40] sm:$0xff] }
 0x10e   : > { %v1315_v46 = vpack.c.bf16 %v638_v41, %v637_v42  ;;  %v585_v47 = vadd.f32 %v584_v45, %v392_v27  ;;  %v653_v27 = vld [vmem:[%s1875_s3 + $0x20] sm:$0xff]  ;;  %v699_v38 = vpop.permute.xlu1 %698 }
 0x10f   : > { %v640_v48 = vmax.f32 %v590_v44, 0.0 }
 0x110   : > { %v639_v50 = vmax.f32 %v585_v47, 0.0  ;;  %v1233_v51 = vpop.f32.mrb[8].mxu0  ;;  %1316 = vmatprep.subr.bf16.mxu0 %v1315_v46  ;;  %1341 = vmatprep.subr.bf16.mxu1 %v1315_v46 }
 0x111   : > { %v600_v53 = vadd.f32 %v1233_v51, %v407_v37  ;;  %v594_v54 = vpop.f32.mrb[9].mxu0  ;;  %1318 = vmatpush3.bf16.msra.mxu0 %v1315_v46  ;;  %1349 = vmatpush3.bf16.msra.mxu1 %v1315_v46  ;;  %v694_v37 = vpop.permute.xlu0 %693 }
 0x112   : > { %v1319_v55 = vpack.c.bf16 %v640_v48, %v639_v50  ;;  %v595_v56 = vadd.f32 %v594_v54, %v402_v40  ;;  %v946_v40 = vpop.permute.xlu1 %945 }
 0x113   : > { %v642_v57 = vmax.f32 %v600_v53, 0.0 }
 0x114   : > { %v641_v58 = vmax.f32 %v595_v56, 0.0  ;;  %v1236_v59 = vpop.f32.mrb[10].mxu0  ;;  %1320 = vmatprep.subr.bf16.mxu0 %v1319_v55  ;;  %1342 = vmatprep.subr.bf16.mxu1 %v1319_v55 }
 0x115   : > { %v610_v60 = vadd.f32 %v1236_v59, %v417_v49  ;;  %v604_v61 = vpop.f32.mrb[11].mxu0  ;;  %1322 = vmatpush3.bf16.msra.mxu0 %v1319_v55  ;;  %1350 = vmatpush3.bf16.msra.mxu1 %v1319_v55  ;;  %v941_v39 = vpop.permute.xlu0 %940 }
 0x116   : > { %v1323_v63 = vpack.c.bf16 %v642_v57, %v641_v58  ;;  %v605_v0 = vadd.f32 %v604_v61, %v412_v52  ;;  %v951_v42 = vpop.permute.xlu1 %950 }
 0x117   : > { %v644_v2 = vmax.f32 %v610_v60, 0.0 }
 0x118   : > { %v643_v3 = vmax.f32 %v605_v0, 0.0  ;;  %v1239_v4 = vpop.f32.mrb[12].mxu0  ;;  %1324 = vmatprep.subr.bf16.mxu0 %v1323_v63  ;;  %1343 = vmatprep.subr.bf16.mxu1 %v1323_v63 }
 0x119   : > { %v620_v5 = vadd.f32 %v1239_v4, %v427_v62  ;;  %v614_v6 = vpop.f32.mrb[13].mxu0  ;;  %1326 = vmatpush3.bf16.msra.mxu0 %v1323_v63  ;;  %1351 = vmatpush3.bf16.msra.mxu1 %v1323_v63  ;;  %v704_v41 = vpop.permute.xlu0 %703 }
 0x11a   : > { %v1327_v7 = vpack.c.bf16 %v644_v2, %v643_v3  ;;  %v615_v8 = vadd.f32 %v614_v6, %v422_v1  ;;  %v956_v44 = vpop.permute.xlu1 %955 }
 0x11b   : > { %v646_v9 = vmax.f32 %v620_v5, 0.0 }
 0x11c   : > { %v645_v11 = vmax.f32 %v615_v8, 0.0  ;;  %v1242_v12 = vpop.f32.mrb[14].mxu0  ;;  %1328 = vmatprep.subr.bf16.mxu0 %v1327_v7  ;;  %1344 = vmatprep.subr.bf16.mxu1 %v1327_v7 }
 0x11d   : > { %v630_v14 = vadd.f32 %v1242_v12, %v437_v10  ;;  %v624_v15 = vpop.f32.mrb[15].mxu0  ;;  %1330 = vmatpush3.bf16.msra.mxu0 %v1327_v7  ;;  %1352 = vmatpush3.bf16.msra.mxu1 %v1327_v7  ;;  %v709_v43 = vpop.permute.xlu0 %708 }
 0x11e   : > { %v1331_v16 = vpack.c.bf16 %v646_v9, %v645_v11  ;;  %v625_v17 = vadd.f32 %v624_v15, %v432_v13  ;;  %v961_v46 = vpop.permute.xlu1 %960 }
 0x11f   : > { %v648_v18 = vmax.f32 %v630_v14, 0.0 }
 0x120   : > { %v647_v19 = vmax.f32 %v625_v17, 0.0  ;;  %1332 = vmatprep.subr.bf16.mxu0 %v1331_v16  ;;  %1345 = vmatprep.subr.bf16.mxu1 %v1331_v16 }
 0x121   : > { %1334 = vmatpush3.bf16.msra.mxu0 %v1331_v16  ;;  %1353 = vmatpush3.bf16.msra.mxu1 %v1331_v16  ;;  %v714_v45 = vpop.permute.xlu0 %713 }
 0x122   : > { %v1335_v20 = vpack.c.bf16 %v648_v18, %v647_v19  ;;  %v966_v48 = vpop.permute.xlu1 %965 }
 0x124   : > { %1336 = vmatprep.subr.bf16.mxu0 %v1335_v20  ;;  %1346 = vmatprep.subr.bf16.mxu1 %v1335_v20 }
 0x125   : > { %1338 = vmatpush3.bf16.msra.mxu0 %v1335_v20  ;;  %1354 = vmatpush3.bf16.msra.mxu1 %v1335_v20  ;;  %v719_v47 = vpop.permute.xlu0 %718 }
 0x126   : > { %v971_v50 = vpop.permute.xlu1 %970 }
 0x128   : > { %1276 = vmatmul.mubr.f32.vlgmr.msra.gmra.mrb[16].mxu0 %v650_v21  ;;  %1285 = vmatmul.mubr.f32.vlgmr.msra.gmra.mrb[0].mxu1 %v656_v22 }
 0x129   : > { %1278 = vmatprep.mubr.f32.mxu0 %v651_v23  ;;  %1287 = vmatprep.mubr.f32.mxu1 %v657_v24  ;;  %v724_v49 = vpop.permute.xlu0 %723 }
 0x12a   : > { %v976_v52 = vpop.permute.xlu1 %975 }
 0x12c   : > { %1279 = vmatmul.mubr.f32.gmra.mrb[18].mxu0 %v652_v25  ;;  %1288 = vmatmul.mubr.f32.gmra.mrb[2].mxu1 %v658_v26 }
 0x12d   : > { %1281 = vmatprep.mubr.f32.mxu0 %v653_v27  ;;  %1290 = vmatprep.mubr.f32.mxu1 %v659_v28  ;;  %v729_v51 = vpop.permute.xlu0 %728 }
 0x12e   : > { %v981_v54 = vpop.permute.xlu1 %980 }
 0x130   : > { %1282 = vmatmul.mubr.f32.gmra.mrb[20].mxu0 %v654_v29  ;;  %1291 = vmatmul.mubr.f32.gmra.mrb[4].mxu1 %v660_v30 }
 0x131   : > { %1293 = vmatprep.mubr.f32.mxu1 %v661_v31  ;;  %v734_v53 = vpop.permute.xlu0 %733 }
 0x132   : > { %v986_v62 = vpop.permute.xlu1 %985 }
 0x134   : > { %1294 = vmatmul.mubr.f32.gmra.mrb[6].mxu1 %v662_v32 }
 0x135   : > { %1296 = vmatprep.mubr.f32.mxu1 %v663_v33  ;;  %v739_v55 = vpop.permute.xlu0 %738 }
 0x136   : > { %v991_v21 = vpop.permute.xlu1 %990 }
 0x138   : > { %1297 = vmatmul.mubr.f32.gmra.mrb[8].mxu1 %v664_v34 }
 0x139   : > { %v744_v9 = vpop.permute.xlu0 %743 }
 0x13d   : > { %v749_v33 = vpop.permute.xlu0 %748 }
 0x1fb   : > { %v1277_v56 = vpop.f32.mrb[16].mxu0  ;;  %v1286_v57 = vpop.f32.mrb[0].mxu1 }
 0x1fc   : > { %v833_v58 = vadd.f32 %v1277_v56, %v689_v36  ;;  %v827_v59 = vpop.f32.mrb[17].mxu0  ;;  %v857_v60 = vpop.f32.mrb[1].mxu1  ;;  %v863_v22 = vadd.f32 %v1286_v57, %v719_v47 }
 0x1fd   : > { %v828_v61 = vadd.f32 %v827_v59, %v684_v35  ;;  %v858_v18 = vadd.f32 %v857_v60, %v714_v45 }
 0x1fe   : > { %v907_v63 = vmax.f32 %v833_v58, 0.0  ;;  %v913_v34 = vmax.f32 %v863_v22, 0.0  ;;  %v754_v58 = vpop.permute.xlu0 %753 }
 0x1ff   : > { %v906_v0 = vmax.f32 %v828_v61, 0.0  ;;  %v1280_v1 = vpop.f32.mrb[18].mxu0  ;;  %v1289_v2 = vpop.f32.mrb[2].mxu1  ;;  %v912_v29 = vmax.f32 %v858_v18, 0.0 }
 0x200   : > { %v1019_v3 = vmul.f32 %v946_v40, %v907_v63  ;;  %v843_v4 = vadd.f32 %v1280_v1, %v699_v38  ;;  %v837_v5 = vpop.f32.mrb[19].mxu0  ;;  %v867_v6 = vpop.f32.mrb[3].mxu1  ;;  %v873_v35 = vadd.f32 %v1289_v2, %v729_v51  ;;  %v1025_v45 = vmul.f32 %v976_v52, %v913_v34 }
 0x201   : > { %v1018_v7 = vmul.f32 %v941_v39, %v906_v0  ;;  %v838_v8 = vadd.f32 %v837_v5, %v694_v37  ;;  %v868_v30 = vadd.f32 %v867_v6, %v724_v49  ;;  %v996_v39 = vpop.permute.xlu1 %995 }
 0x202   : > { %v909_v11 = vmax.f32 %v843_v4, 0.0  ;;  %v915_v47 = vmax.f32 %v873_v35, 0.0  ;;  %v759_v4 = vpop.permute.xlu0 %758 }
 0x203   : > { %v1034_v10 = vadd.f32 %v1019_v3, %v1018_v7  ;;  %v908_v12 = vmax.f32 %v838_v8, 0.0  ;;  %v1283_v13 = vpop.f32.mrb[20].mxu0  ;;  %v1292_v14 = vpop.f32.mrb[4].mxu1 }
 0x204   : > { %v853_v15 = vadd.f32 %v1283_v13, %v709_v43  ;;  %v847_v16 = vpop.f32.mrb[21].mxu0  ;;  %v877_v17 = vpop.f32.mrb[5].mxu1  ;;  %v1021_v23 = vmul.f32 %v956_v44, %v909_v11  ;;  %v883_v56 = vadd.f32 %v1292_v14, %v739_v55  ;;  %v1027_v51 = vmul.f32 %v986_v62, %v915_v47 }
 0x205   : > { %v1020_v19 = vmul.f32 %v951_v42, %v908_v12  ;;  %v848_v20 = vadd.f32 %v847_v16, %v704_v41  ;;  %v1024_v41 = vmul.f32 %v971_v50, %v912_v29  ;;  %v914_v42 = vmax.f32 %v868_v30, 0.0  ;;  %v1001_v61 = vpop.permute.xlu1 %1000 }
 0x206   : > { %v911_v25 = vmax.f32 %v853_v15, 0.0  ;;  %v878_v44 = vadd.f32 %v877_v17, %v734_v53  ;;  %v1011_v11 = vpop.permute.xlu0 %1010 }
 0x207   : > { %v1035_v24 = vadd.f32 %v1034_v10, %v1020_v19  ;;  %v910_v26 = vmax.f32 %v848_v20, 0.0  ;;  %v1295_v27 = vpop.f32.mrb[6].mxu1  ;;  %v1026_v49 = vmul.f32 %v981_v54, %v914_v42 }
 0x208   : > { %v887_v28 = vpop.f32.mrb[7].mxu1  ;;  %v1023_v36 = vmul.f32 %v966_v48, %v911_v25  ;;  %v917_v48 = vmax.f32 %v883_v56, 0.0  ;;  %v893_v0 = vadd.f32 %v1295_v27, %v749_v33 }
 0x209   : > { %v1022_v31 = vmul.f32 %v961_v46, %v910_v26  ;;  %v1036_v32 = vadd.f32 %v1035_v24, %v1021_v23  ;;  %v916_v46 = vmax.f32 %v878_v44, 0.0  ;;  %v888_v60 = vadd.f32 %v887_v28, %v744_v9  ;;  %v1006_v6 = vpop.permute.xlu1 %1005 }
 0x20a   : > { %v1029_v53 = vmul.f32 %v996_v39, %v917_v48  ;;  %v919_v5 = vmax.f32 %v893_v0, 0.0  ;;  %v1056_v23 = vstv %s1055_s15 }
 0x20b   : > { %v1037_v37 = vadd.f32 %v1036_v32, %v1022_v31  ;;  %v1298_v38 = vpop.f32.mrb[8].mxu1  ;;  %v1028_v1 = vmul.f32 %v991_v21, %v916_v46  ;;  %v918_v50 = vmax.f32 %v888_v60, 0.0 }
 0x20c   : > { %v897_v40 = vpop.f32.mrb[9].mxu1  ;;  %v903_v55 = vadd.f32 %v1298_v38, %v759_v4  ;;  %v1031_v10 = vmul.f32 %v1006_v6, %v919_v5 }
 0x20d   : > { %v1038_v43 = vadd.f32 %v1037_v37, %v1023_v36  ;;  %v898_v3 = vadd.f32 %v897_v40, %v754_v58  ;;  %v1030_v7 = vmul.f32 %v1001_v61, %v918_v50  ;;  %v1016_v14 = vpop.permute.xlu1 %1015 }
 0x20e   : > { %v921_v62 = vmax.f32 %v903_v55, 0.0 }
 0x20f   : > { %v1039_v57 = vadd.f32 %v1038_v43, %v1024_v41  ;;  %v920_v8 = vmax.f32 %v898_v3, 0.0 }
 0x210   : > { %v1033_v15 = vmul.f32 %v1016_v14, %v921_v62 }
 0x211   : > { %v1040_v59 = vadd.f32 %v1039_v57, %v1025_v45  ;;  %v1032_v12 = vmul.f32 %v1011_v11, %v920_v8 }
 0x213   : > { %v1041_v63 = vadd.f32 %v1040_v59, %v1026_v49 }
 0x215   : > { %v1042_v2 = vadd.f32 %v1041_v63, %v1027_v51 }
 0x217   : > { %v1043_v52 = vadd.f32 %v1042_v2, %v1028_v1 }
 0x219   : > { %v1044_v54 = vadd.f32 %v1043_v52, %v1029_v53 }
 0x21b   : > { %v1045_v9 = vadd.f32 %v1044_v54, %v1030_v7 }
 0x21d   : > { %v1046_v13 = vadd.f32 %v1045_v9, %v1031_v10 }
 0x21f   : > { %v1047_v16 = vadd.f32 %v1046_v13, %v1032_v12 }
 0x221   : > { %v1048_v17 = vadd.f32 %v1047_v16, %v1033_v15 }
 0x223   : > { %v1049_v18 = vrot.slane %v1048_v17, 4 }
 0x225   : > { %v1050_v19 = vadd.f32 %v1049_v18, %v1048_v17 }
 0x227   : > { %v1051_v20 = vrot.slane %v1050_v19, 2 }
 0x229   : > { %v1052_v21 = vadd.f32 %v1051_v20, %v1050_v19 }
 0x22b   : > { %v1053_v22 = vrot.slane %v1052_v21, 1 }
 0x22d   : > { %v1054_v24 = vadd.f32 %v1053_v22, %v1052_v21 }
 0x22f   : > { %v1057_v25 = vadd.f32 %v1056_v23, %v1054_v24 }
 0x231   : > { %1058 = vst [vmem:[%s322_s17] sm:$0x1] %v1057_v25 }
 0x232   : > { %1410 = shalt.err (!%p1407_p5)
}
 0x233   : > { %s1411_s23 = scalar_lea.hbm %s1828_s21, 16  ;;  %s1415_s14 = scalar_lea.hbm %s1879_s7, 32 }
 0x234   : > { %p1412_p7 = scmp.ne.s32.totalorder %s1828_s21, %s1411_s23  ;;  %p1416_p12 = scmp.lt.u32.totalorder %s1828_s21, %s1879_s7 }
 0x235   : > { %p1417_p13 = scmp.lt.u32.totalorder %s1415_s14, %s1411_s23  ;;  %p1419_p1 = scmp.lt.u32.totalorder %s1411_s23, %s1828_s21 }
 0x236   : > { %p1413_p10 = pnand %p1412_p7, %p1544_p6 }
 0x237   : > { %p1418_p0 = por %p1417_p13, %p1416_p12 }
 0x238   : > { %p1414_p11 = pneg %p1413_p10 }
 0x239   : > { %p1420_p2 = por %p1419_p1, %p1418_p0 }
 0x23b   : > { %p1421_p3 = pnand %p1420_p2, %p1414_p11 }
 0x23d   : > { %1424 = shalt.err (!%p1421_p3)
}
 0x23e   : > { %1355 = dma.vmem_to_hbm [thread:$0]  (%p1544_p6), %s1830_s18, 16, %s1828_s21, %s1060_s22  }
 0x23f PF: > { %s1084_s17 = sand.u32 1, %s1447_s26   ;;  %p1358_p4 = pnand %p1135_p9, %p1548_p8 }
 0x240   : > { %s1085_s19 = scalar_lea.sflag [#allocation5], %s1084_s17 }
 0x241   : > { %1442 = dma.done.wait (!%p1358_p4), %s1085_s19, 16  }
 0x242   : > { %1444 = vsyncadd (!%p1358_p4), %s1085_s19, 4294967280  ;;  %p18_p5 = scmp.ge.s32.totalorder %s1529_s8, 4   ;;  %s1882_s26 = smov %s1451_s27 }
 0x243   : > { %s1883_s27 = smov %s1455_s28  ;;  %s1884_s28 = smov %s1542_s11 }
 0x244   : > { %s1885_s29 = smov %s1529_s8  ;;  %20 = sbr.rel (!%p18_p5) target bundleno = 5 (0x5), region = 126 }
 0x24b   :  { %1089 = vsyncpa [#allocation5], 1 }
 0x24c   :  { %1091 = vsyncpa [#allocation5 + $0x1], 1 }

</bundles_post_ra>
